<compile_context>
chip_gen: v6e
topology: v6e:2x2x1
jax: 0.10.0
libtpu: 0.0.40
codegen_flags: <defaults>
</compile_context>

<pallas_src>
import jax
import jax.numpy as jnp
from jax import lax
from jax.experimental import pallas as pl
from jax.experimental.pallas import tpu as pltpu
from functools import partial


def mha_kernel(x_ref, wqkv_ref, wp_ref, bp_ref, mask_ref,
               out_ref, wei_ref, acc_ref, hv_ref, *, head_dim, group):
    """One grid step == (batch element b, head-group j) covering `group` heads.

    x_ref    : (1, T, C)              input tokens for batch b
    wqkv_ref : (1, 3, C, G*hd)        operand-major packed Q/K/V weights (Q scaled)
    wp_ref   : (1, G*hd, C)           this group's rows of the output projection
    bp_ref   : (1, C)                 projection bias
    mask_ref : (T, T) f32             additive causal mask (0 / -inf), constant
    out_ref  : (1, T, C)              projected output (resident across groups)
    wei_ref  : (1, G, T, T)           this group's post-softmax attention weights
    acc_ref  : (T, C) f32 VMEM        projection accumulator
    hv_ref   : (T, G*hd) f32 VMEM     per-group concatenated (P @ V) staging buffer
    """
    jg = pl.program_id(1)
    n_groups = pl.num_programs(1)

    @pl.when(jg == 0)
    def _init():
        acc_ref[...] = jnp.zeros_like(acc_ref)

    x = x_ref[0]                                   # (T, C), storage dtype

    # Wide, lane-dense per-operand projections (N = G*hd); indexing the leading
    # axis of wqkv_ref avoids slicing a fused matmul result mid-vreg.
    q = jnp.dot(x, wqkv_ref[0, 0], preferred_element_type=jnp.float32)  # (T, G*hd)
    k = jnp.dot(x, wqkv_ref[0, 1], preferred_element_type=jnp.float32)
    v = jnp.dot(x, wqkv_ref[0, 2], preferred_element_type=jnp.float32)

    mask = mask_ref[...]                           # (T, T), 0 / -inf, precomputed

    # Static unroll over the heads in this group (per-head score/softmax/PV stay
    # per-head; head_dim-wide column slices are accepted here — the alternative,
    # a lane->sublane reshape into (T, G, hd), costs comparable relayout).
    for g in range(group):
        lo = g * head_dim
        hi = lo + head_dim
        qg = q[:, lo:hi]                           # 1/sqrt(hd) already folded in
        kg = k[:, lo:hi]
        vg = v[:, lo:hi]

        # scores: contract head_dim without an explicit transpose of kg
        s = lax.dot_general(qg, kg, (((1,), (1,)), ((), ())),
                            preferred_element_type=jnp.float32)        # (T, T)
        s = s + mask                               # causal: -inf above diagonal

        # numerically stable softmax (f32); diagonal always unmasked -> no NaNs
        s = s - jnp.max(s, axis=-1, keepdims=True)
        p = jnp.exp(s)
        # exact reciprocal kept for <=1e-5 parity with the reference; approx=True
        # would move the divide to the otherwise-idle EUP slot.
        p = p * pl.reciprocal(jnp.sum(p, axis=-1, keepdims=True), approx=False)

        # lane-dense (key axis last, width T) store of this head's weights
        wei_ref[0, g] = p.astype(wei_ref.dtype)

        # stage this head's (P @ V) into its column block of the group buffer
        hv_ref[:, lo:hi] = jnp.dot(p, vg, preferred_element_type=jnp.float32)

    # One wide (T, G*hd) @ (G*hd, C) projection for the whole head group,
    # accumulated directly — no per-head narrow-K projection matmuls.
    acc_ref[...] += jnp.dot(hv_ref[...], wp_ref[0],
                            preferred_element_type=jnp.float32)

    @pl.when(jg == n_groups - 1)
    def _finalize():
        out_ref[0] = (acc_ref[...] + bp_ref[...].astype(jnp.float32)
                      ).astype(out_ref.dtype)


def _pick_group(n_head, head_dim, max_lanes=512):
    """Largest divisor g of n_head with g*head_dim <= max_lanes (>= 1)."""
    best = 1
    for g in range(1, n_head + 1):
        if n_head % g == 0 and g * head_dim <= max_lanes:
            best = g
    return best


def multi_head_attention(x, wq, wk, wv, wp, bp, *, wei_dtype=jnp.float32):
    """x: (B,T,C); wq/wk/wv: (n_head, C, hd); wp: (C, C) in->out; bp: (C,).

    Returns (out, wei) matching the PyTorch module (eval mode).
    Set wei_dtype=jnp.bfloat16 to halve the (B, n_head, T, T) HBM writeback when
    exact f32 parity of the returned attention weights is not required.
    """
    B, T, C = x.shape
    n_head, _, head_dim = wq.shape
    assert n_head * head_dim == C

    group = _pick_group(n_head, head_dim)          # heads per grid step
    n_groups = n_head // group
    gw = group * head_dim                          # group weight width

    # Fold 1/sqrt(head_dim) into Q; pack per group, operand-major:
    # (n_groups, 3, C, group*head_dim) so the kernel never slices a fused result.
    scale = float(head_dim) ** -0.5

    def pack(w):  # (n_head, C, hd) -> (n_groups, C, group*hd), head-major columns
        return (w.reshape(n_groups, group, C, head_dim)
                 .transpose(0, 2, 1, 3)
                 .reshape(n_groups, C, gw))

    wqkv = jnp.stack([pack(wq * scale), pack(wk), pack(wv)], axis=1)  # (ng,3,C,gw)
    wp_g = wp.reshape(n_groups, gw, C)             # per-group rows of wp
    bp2 = bp.reshape(1, C)

    # Additive causal mask built once host-side; constant index_map -> one DMA,
    # stays VMEM-resident for the whole grid (no per-step iota/compare).
    rows = jnp.arange(T, dtype=jnp.int32)[:, None]
    cols = jnp.arange(T, dtype=jnp.int32)[None, :]
    mask = jnp.where(cols <= rows, 0.0, -jnp.inf).astype(jnp.float32)

    kernel = partial(mha_kernel, head_dim=head_dim, group=group)

    out, wei = pl.pallas_call(
        kernel,
        out_shape=(
            jax.ShapeDtypeStruct((B, T, C), x.dtype),
            jax.ShapeDtypeStruct((B, n_head, T, T), wei_dtype),
        ),
        grid_spec=pltpu.PrefetchScalarGridSpec(
            num_scalar_prefetch=0,
            grid=(B, n_groups),        # head-group axis = reduction axis (inner)
            in_specs=[
                pl.BlockSpec((1, T, C), lambda b, j: (b, 0, 0)),
                pl.BlockSpec((1, 3, C, gw), lambda b, j: (j, 0, 0, 0)),
                pl.BlockSpec((1, gw, C), lambda b, j: (j, 0, 0)),
                pl.BlockSpec((1, C), lambda b, j: (0, 0)),
                pl.BlockSpec((T, T), lambda b, j: (0, 0)),
            ],
            out_specs=[
                pl.BlockSpec((1, T, C), lambda b, j: (b, 0, 0)),
                pl.BlockSpec((1, group, T, T), lambda b, j: (b, j, 0, 0)),
            ],
            scratch_shapes=[
                pltpu.VMEM((T, C), jnp.float32),     # projection accumulator
                pltpu.VMEM((T, gw), jnp.float32),    # per-group PV staging
            ],
        ),
        compiler_params=pltpu.CompilerParams(
            dimension_semantics=("parallel", "arbitrary"),
            # Above the 16/32 MiB defaults so intended tiles keep full
            # double-buffering; <= physical VMEM on v5e/v6e/v7x.
            vmem_limit_bytes=64 * 1024 * 1024),
    )(x, wqkv, wp_g, bp2, mask)
    return out, wei


def reference_mha(x, wq, wk, wv, wp, bp):
    """Pure-JAX reference mirroring the PyTorch module (eval mode)."""
    B, T, C = x.shape
    n_head, _, hd = wq.shape
    outs, weis = [], []
    tril = jnp.tril(jnp.ones((T, T)))
    for h in range(n_head):
        q = x @ wq[h]
        k = x @ wk[h]
        v = x @ wv[h]
        s = (q @ jnp.swapaxes(k, -2, -1)) * (hd ** -0.5)
        s = jnp.where(tril == 0, -jnp.inf, s)
        p = jax.nn.softmax(s, axis=-1)
        weis.append(p)
        outs.append(p @ v)
    cat = jnp.concatenate(outs, axis=-1)
    out = cat @ wp + bp
    return out, jnp.stack(weis, axis=1)


if __name__ == "__main__":
    # small config: block_size >= T, n_embd=32, n_head=4, dropout treated as 0
    B, T, C, n_head = 2, 8, 32, 4
    hd = C // n_head

    key = jax.random.PRNGKey(0)
    kx, kq, kk, kv, kp, kb = jax.random.split(key, 6)

    x = jax.random.normal(kx, (B, T, C), dtype=jnp.float32)
    # nn.Linear(C, hd, bias=False).weight is (hd, C); store transposed (C, hd) per head
    wq = jax.random.normal(kq, (n_head, C, hd), dtype=jnp.float32) * 0.1
    wk = jax.random.normal(kk, (n_head, C, hd), dtype=jnp.float32) * 0.1
    wv = jax.random.normal(kv, (n_head, C, hd), dtype=jnp.float32) * 0.1
    # nn.Linear(C, C).weight is (C, C); store transposed (in, out)
    wp = jax.random.normal(kp, (C, C), dtype=jnp.float32) * 0.1
    bp = jax.random.normal(kb, (C,), dtype=jnp.float32) * 0.1

    out, wei = multi_head_attention(x, wq, wk, wv, wp, bp)
    out = jax.block_until_ready(out)
    wei = jax.block_until_ready(wei)

    ref_out, ref_wei = reference_mha(x, wq, wk, wv, wp, bp)
    assert out.shape == (B, T, C)
    assert wei.shape == (B, n_head, T, T)
    assert jnp.allclose(out, ref_out, atol=1e-5, rtol=1e-5)
    assert jnp.allclose(wei, ref_wei, atol=1e-5, rtol=1e-5)

    print("KERNEL_OK")
</pallas_src>

<mosaic_0001>
module attributes {stable_mosaic.version = 11 : i64} {
  func.func @mha_kernel(%arg0: i32, %arg1: i32, %arg2: memref<1x8x32xf32, #tpu.memory_space<vmem>>, %arg3: memref<1x3x32x32xf32, #tpu.memory_space<vmem>>, %arg4: memref<1x32x32xf32, #tpu.memory_space<vmem>>, %arg5: memref<1x32xf32, #tpu.memory_space<vmem>>, %arg6: memref<8x8xf32, #tpu.memory_space<vmem>>, %arg7: memref<1x8x32xf32, #tpu.memory_space<vmem>>, %arg8: memref<1x4x8x8xf32, #tpu.memory_space<vmem>>, %arg9: memref<8x32xf32, #tpu.memory_space<vmem>>, %arg10: memref<8x32xf32, #tpu.memory_space<vmem>>) attributes {dimension_semantics = [#tpu.dimension_semantics<parallel>, #tpu.dimension_semantics<arbitrary>], iteration_bounds = array<i64: 2, 1>, scalar_prefetch = 0 : i64, scratch_operands = 2 : i64, tpu.core_type = #tpu.core_type<tc>, window_params = [{transform_indices = @transform_0, window_bounds = array<i64: 1, 8, 32>}, {transform_indices = @transform_1, window_bounds = array<i64: 1, 3, 32, 32>}, {transform_indices = @transform_2, window_bounds = array<i64: 1, 32, 32>}, {pipeline_mode = #tpu.pipeline_mode<synchronous>, transform_indices = @transform_3, window_bounds = array<i64: 1, 32>}, {pipeline_mode = #tpu.pipeline_mode<synchronous>, transform_indices = @transform_4, window_bounds = array<i64: 8, 8>}, {transform_indices = @transform_5, window_bounds = array<i64: 1, 8, 32>}, {transform_indices = @transform_6, window_bounds = array<i64: 1, 4, 8, 8>}]} {
    %c0_i32 = arith.constant 0 : i32
    %0 = arith.cmpi eq, %arg1, %c0_i32 : i32
    %1 = arith.extui %0 : i1 to i32
    %c0_i32_0 = arith.constant 0 : i32
    %2 = arith.cmpi ne, %1, %c0_i32_0 : i32
    scf.if %2 {
      %cst_65 = arith.constant 0.000000e+00 : f32
      %105 = vector.broadcast %cst_65 : f32 to vector<8x32xf32>
      %c0_66 = arith.constant 0 : index
      %c0_67 = arith.constant 0 : index
      %106 = vector.load %arg9[%c0_66, %c0_67] : memref<8x32xf32, #tpu.memory_space<vmem>>, vector<8x32xf32>
      tpu.vector_store %arg9[%c0_66, %c0_67], %105 {strides = array<i32>} : memref<8x32xf32, #tpu.memory_space<vmem>>, vector<8x32xf32>,
    } else {
    }
    %c0 = arith.constant 0 : index
    %c0_1 = arith.constant 0 : index
    %c0_2 = arith.constant 0 : index
    %3 = vector.load %arg2[%c0, %c0_1, %c0_2] : memref<1x8x32xf32, #tpu.memory_space<vmem>>, vector<1x8x32xf32>
    %4 = vector.shape_cast %3 : vector<1x8x32xf32> to vector<8x32xf32>
    %c0_3 = arith.constant 0 : index
    %c0_4 = arith.constant 0 : index
    %c0_5 = arith.constant 0 : index
    %c0_6 = arith.constant 0 : index
    %5 = vector.load %arg3[%c0_3, %c0_4, %c0_5, %c0_6] : memref<1x3x32x32xf32, #tpu.memory_space<vmem>>, vector<1x1x32x32xf32>
    %6 = vector.shape_cast %5 : vector<1x1x32x32xf32> to vector<32x32xf32>
    %cst = arith.constant dense<0.000000e+00> : vector<8x32xf32>
    %7 = tpu.matmul %4, %6, %cst {dimension_numbers = #tpu.dot_dimension_numbers<[1], [0], [0], [1], [0, 0, 1, 1], [], []>} : vector<8x32xf32>, vector<32x32xf32>, vector<8x32xf32> -> vector<8x32xf32>
    %c0_7 = arith.constant 0 : index
    %c1 = arith.constant 1 : index
    %c0_8 = arith.constant 0 : index
    %c0_9 = arith.constant 0 : index
    %8 = vector.load %arg3[%c0_7, %c1, %c0_8, %c0_9] : memref<1x3x32x32xf32, #tpu.memory_space<vmem>>, vector<1x1x32x32xf32>
    %9 = vector.shape_cast %8 : vector<1x1x32x32xf32> to vector<32x32xf32>
    %cst_10 = arith.constant dense<0.000000e+00> : vector<8x32xf32>
    %10 = tpu.matmul %4, %9, %cst_10 {dimension_numbers = #tpu.dot_dimension_numbers<[1], [0], [0], [1], [0, 0, 1, 1], [], []>} : vector<8x32xf32>, vector<32x32xf32>, vector<8x32xf32> -> vector<8x32xf32>
    %c0_11 = arith.constant 0 : index
    %c2 = arith.constant 2 : index
    %c0_12 = arith.constant 0 : index
    %c0_13 = arith.constant 0 : index
    %11 = vector.load %arg3[%c0_11, %c2, %c0_12, %c0_13] : memref<1x3x32x32xf32, #tpu.memory_space<vmem>>, vector<1x1x32x32xf32>
    %12 = vector.shape_cast %11 : vector<1x1x32x32xf32> to vector<32x32xf32>
    %cst_14 = arith.constant dense<0.000000e+00> : vector<8x32xf32>
    %13 = tpu.matmul %4, %12, %cst_14 {dimension_numbers = #tpu.dot_dimension_numbers<[1], [0], [0], [1], [0, 0, 1, 1], [], []>} : vector<8x32xf32>, vector<32x32xf32>, vector<8x32xf32> -> vector<8x32xf32>
    %c0_15 = arith.constant 0 : index
    %c0_16 = arith.constant 0 : index
    %14 = vector.load %arg6[%c0_15, %c0_16] : memref<8x8xf32, #tpu.memory_space<vmem>>, vector<8x8xf32>
    %15 = vector.extract_strided_slice %7 {offsets = [0, 0], sizes = [8, 8], strides = [1, 1]} : vector<8x32xf32> to vector<8x8xf32>
    %16 = vector.extract_strided_slice %10 {offsets = [0, 0], sizes = [8, 8], strides = [1, 1]} : vector<8x32xf32> to vector<8x8xf32>
    %17 = vector.extract_strided_slice %13 {offsets = [0, 0], sizes = [8, 8], strides = [1, 1]} : vector<8x32xf32> to vector<8x8xf32>
    %cst_17 = arith.constant dense<0.000000e+00> : vector<8x8xf32>
    %18 = tpu.matmul %15, %16, %cst_17 {dimension_numbers = #tpu.dot_dimension_numbers<[1], [1], [0], [0], [0, 0, 1, 0], [], []>} : vector<8x8xf32>, vector<8x8xf32>, vector<8x8xf32> -> vector<8x8xf32>
    %19 = arith.addf %18, %14 : vector<8x8xf32>
    %cst_18 = arith.constant dense<0xFF800000> : vector<8xf32>
    %20 = vector.multi_reduction <maximumf>, %19, %cst_18 [1] : vector<8x8xf32> to vector<8xf32>
    %21 = vector.shape_cast %20 : vector<8xf32> to vector<8x1xf32>
    %22 = vector.broadcast %21 : vector<8x1xf32> to vector<8x8xf32>
    %23 = arith.subf %19, %22 : vector<8x8xf32>
    %24 = math.exp %23 : vector<8x8xf32>
    %cst_19 = arith.constant dense<0.000000e+00> : vector<8xf32>
    %25 = vector.multi_reduction <add>, %24, %cst_19 [1] : vector<8x8xf32> to vector<8xf32>
    %26 = vector.shape_cast %25 : vector<8xf32> to vector<8x1xf32>
    %27 = tpu.reciprocal %26 : vector<8x1xf32> -> vector<8x1xf32>
    %28 = vector.broadcast %27 : vector<8x1xf32> to vector<8x8xf32>
    %29 = arith.mulf %24, %28 : vector<8x8xf32>
    %c0_20 = arith.constant 0 : index
    %c0_21 = arith.constant 0 : index
    %c0_22 = arith.constant 0 : index
    %c0_23 = arith.constant 0 : index
    %30 = vector.load %arg8[%c0_20, %c0_21, %c0_22, %c0_23] : memref<1x4x8x8xf32, #tpu.memory_space<vmem>>, vector<1x1x8x8xf32>
    %31 = vector.shape_cast %30 : vector<1x1x8x8xf32> to vector<8x8xf32>
    %32 = vector.shape_cast %29 : vector<8x8xf32> to vector<1x1x8x8xf32>
    tpu.vector_store %arg8[%c0_20, %c0_21, %c0_22, %c0_23], %32 {strides = array<i32>} : memref<1x4x8x8xf32, #tpu.memory_space<vmem>>, vector<1x1x8x8xf32>,
    %cst_24 = arith.constant dense<0.000000e+00> : vector<8x8xf32>
    %33 = tpu.matmul %29, %17, %cst_24 {dimension_numbers = #tpu.dot_dimension_numbers<[1], [0], [0], [1], [0, 0, 1, 1], [], []>} : vector<8x8xf32>, vector<8x8xf32>, vector<8x8xf32> -> vector<8x8xf32>
    %c0_25 = arith.constant 0 : index
    %c0_26 = arith.constant 0 : index
    %34 = vector.load %arg10[%c0_25, %c0_26] : memref<8x32xf32, #tpu.memory_space<vmem>>, vector<8x8xf32>
    tpu.vector_store %arg10[%c0_25, %c0_26], %33 {strides = array<i32>} : memref<8x32xf32, #tpu.memory_space<vmem>>, vector<8x8xf32>,
    %35 = vector.extract_strided_slice %7 {offsets = [0, 8], sizes = [8, 8], strides = [1, 1]} : vector<8x32xf32> to vector<8x8xf32>
    %36 = vector.extract_strided_slice %10 {offsets = [0, 8], sizes = [8, 8], strides = [1, 1]} : vector<8x32xf32> to vector<8x8xf32>
    %37 = vector.extract_strided_slice %13 {offsets = [0, 8], sizes = [8, 8], strides = [1, 1]} : vector<8x32xf32> to vector<8x8xf32>
    %cst_27 = arith.constant dense<0.000000e+00> : vector<8x8xf32>
    %38 = tpu.matmul %35, %36, %cst_27 {dimension_numbers = #tpu.dot_dimension_numbers<[1], [1], [0], [0], [0, 0, 1, 0], [], []>} : vector<8x8xf32>, vector<8x8xf32>, vector<8x8xf32> -> vector<8x8xf32>
    %39 = arith.addf %38, %14 : vector<8x8xf32>
    %cst_28 = arith.constant dense<0xFF800000> : vector<8xf32>
    %40 = vector.multi_reduction <maximumf>, %39, %cst_28 [1] : vector<8x8xf32> to vector<8xf32>
    %41 = vector.shape_cast %40 : vector<8xf32> to vector<8x1xf32>
    %42 = vector.broadcast %41 : vector<8x1xf32> to vector<8x8xf32>
    %43 = arith.subf %39, %42 : vector<8x8xf32>
    %44 = math.exp %43 : vector<8x8xf32>
    %cst_29 = arith.constant dense<0.000000e+00> : vector<8xf32>
    %45 = vector.multi_reduction <add>, %44, %cst_29 [1] : vector<8x8xf32> to vector<8xf32>
    %46 = vector.shape_cast %45 : vector<8xf32> to vector<8x1xf32>
    %47 = tpu.reciprocal %46 : vector<8x1xf32> -> vector<8x1xf32>
    %48 = vector.broadcast %47 : vector<8x1xf32> to vector<8x8xf32>
    %49 = arith.mulf %44, %48 : vector<8x8xf32>
    %c0_30 = arith.constant 0 : index
    %c1_31 = arith.constant 1 : index
    %c0_32 = arith.constant 0 : index
    %c0_33 = arith.constant 0 : index
    %50 = vector.load %arg8[%c0_30, %c1_31, %c0_32, %c0_33] : memref<1x4x8x8xf32, #tpu.memory_space<vmem>>, vector<1x1x8x8xf32>
    %51 = vector.shape_cast %50 : vector<1x1x8x8xf32> to vector<8x8xf32>
    %52 = vector.shape_cast %49 : vector<8x8xf32> to vector<1x1x8x8xf32>
    tpu.vector_store %arg8[%c0_30, %c1_31, %c0_32, %c0_33], %52 {strides = array<i32>} : memref<1x4x8x8xf32, #tpu.memory_space<vmem>>, vector<1x1x8x8xf32>,
    %cst_34 = arith.constant dense<0.000000e+00> : vector<8x8xf32>
    %53 = tpu.matmul %49, %37, %cst_34 {dimension_numbers = #tpu.dot_dimension_numbers<[1], [0], [0], [1], [0, 0, 1, 1], [], []>} : vector<8x8xf32>, vector<8x8xf32>, vector<8x8xf32> -> vector<8x8xf32>
    %c0_35 = arith.constant 0 : index
    %c8 = arith.constant 8 : index
    %54 = vector.load %arg10[%c0_35, %c8] : memref<8x32xf32, #tpu.memory_space<vmem>>, vector<8x8xf32>
    tpu.vector_store %arg10[%c0_35, %c8], %53 {strides = array<i32>} : memref<8x32xf32, #tpu.memory_space<vmem>>, vector<8x8xf32>,
    %55 = vector.extract_strided_slice %7 {offsets = [0, 16], sizes = [8, 8], strides = [1, 1]} : vector<8x32xf32> to vector<8x8xf32>
    %56 = vector.extract_strided_slice %10 {offsets = [0, 16], sizes = [8, 8], strides = [1, 1]} : vector<8x32xf32> to vector<8x8xf32>
    %57 = vector.extract_strided_slice %13 {offsets = [0, 16], sizes = [8, 8], strides = [1, 1]} : vector<8x32xf32> to vector<8x8xf32>
    %cst_36 = arith.constant dense<0.000000e+00> : vector<8x8xf32>
    %58 = tpu.matmul %55, %56, %cst_36 {dimension_numbers = #tpu.dot_dimension_numbers<[1], [1], [0], [0], [0, 0, 1, 0], [], []>} : vector<8x8xf32>, vector<8x8xf32>, vector<8x8xf32> -> vector<8x8xf32>
    %59 = arith.addf %58, %14 : vector<8x8xf32>
    %cst_37 = arith.constant dense<0xFF800000> : vector<8xf32>
    %60 = vector.multi_reduction <maximumf>, %59, %cst_37 [1] : vector<8x8xf32> to vector<8xf32>
    %61 = vector.shape_cast %60 : vector<8xf32> to vector<8x1xf32>
    %62 = vector.broadcast %61 : vector<8x1xf32> to vector<8x8xf32>
    %63 = arith.subf %59, %62 : vector<8x8xf32>
    %64 = math.exp %63 : vector<8x8xf32>
    %cst_38 = arith.constant dense<0.000000e+00> : vector<8xf32>
    %65 = vector.multi_reduction <add>, %64, %cst_38 [1] : vector<8x8xf32> to vector<8xf32>
    %66 = vector.shape_cast %65 : vector<8xf32> to vector<8x1xf32>
    %67 = tpu.reciprocal %66 : vector<8x1xf32> -> vector<8x1xf32>
    %68 = vector.broadcast %67 : vector<8x1xf32> to vector<8x8xf32>
    %69 = arith.mulf %64, %68 : vector<8x8xf32>
    %c0_39 = arith.constant 0 : index
    %c2_40 = arith.constant 2 : index
    %c0_41 = arith.constant 0 : index
    %c0_42 = arith.constant 0 : index
    %70 = vector.load %arg8[%c0_39, %c2_40, %c0_41, %c0_42] : memref<1x4x8x8xf32, #tpu.memory_space<vmem>>, vector<1x1x8x8xf32>
    %71 = vector.shape_cast %70 : vector<1x1x8x8xf32> to vector<8x8xf32>
    %72 = vector.shape_cast %69 : vector<8x8xf32> to vector<1x1x8x8xf32>
    tpu.vector_store %arg8[%c0_39, %c2_40, %c0_41, %c0_42], %72 {strides = array<i32>} : memref<1x4x8x8xf32, #tpu.memory_space<vmem>>, vector<1x1x8x8xf32>,
    %cst_43 = arith.constant dense<0.000000e+00> : vector<8x8xf32>
    %73 = tpu.matmul %69, %57, %cst_43 {dimension_numbers = #tpu.dot_dimension_numbers<[1], [0], [0], [1], [0, 0, 1, 1], [], []>} : vector<8x8xf32>, vector<8x8xf32>, vector<8x8xf32> -> vector<8x8xf32>
    %c0_44 = arith.constant 0 : index
    %c16 = arith.constant 16 : index
    %74 = vector.load %arg10[%c0_44, %c16] : memref<8x32xf32, #tpu.memory_space<vmem>>, vector<8x8xf32>
    tpu.vector_store %arg10[%c0_44, %c16], %73 {strides = array<i32>} : memref<8x32xf32, #tpu.memory_space<vmem>>, vector<8x8xf32>,
    %75 = vector.extract_strided_slice %7 {offsets = [0, 24], sizes = [8, 8], strides = [1, 1]} : vector<8x32xf32> to vector<8x8xf32>
    %76 = vector.extract_strided_slice %10 {offsets = [0, 24], sizes = [8, 8], strides = [1, 1]} : vector<8x32xf32> to vector<8x8xf32>
    %77 = vector.extract_strided_slice %13 {offsets = [0, 24], sizes = [8, 8], strides = [1, 1]} : vector<8x32xf32> to vector<8x8xf32>
    %cst_45 = arith.constant dense<0.000000e+00> : vector<8x8xf32>
    %78 = tpu.matmul %75, %76, %cst_45 {dimension_numbers = #tpu.dot_dimension_numbers<[1], [1], [0], [0], [0, 0, 1, 0], [], []>} : vector<8x8xf32>, vector<8x8xf32>, vector<8x8xf32> -> vector<8x8xf32>
    %79 = arith.addf %78, %14 : vector<8x8xf32>
    %cst_46 = arith.constant dense<0xFF800000> : vector<8xf32>
    %80 = vector.multi_reduction <maximumf>, %79, %cst_46 [1] : vector<8x8xf32> to vector<8xf32>
    %81 = vector.shape_cast %80 : vector<8xf32> to vector<8x1xf32>
    %82 = vector.broadcast %81 : vector<8x1xf32> to vector<8x8xf32>
    %83 = arith.subf %79, %82 : vector<8x8xf32>
    %84 = math.exp %83 : vector<8x8xf32>
    %cst_47 = arith.constant dense<0.000000e+00> : vector<8xf32>
    %85 = vector.multi_reduction <add>, %84, %cst_47 [1] : vector<8x8xf32> to vector<8xf32>
    %86 = vector.shape_cast %85 : vector<8xf32> to vector<8x1xf32>
    %87 = tpu.reciprocal %86 : vector<8x1xf32> -> vector<8x1xf32>
    %88 = vector.broadcast %87 : vector<8x1xf32> to vector<8x8xf32>
    %89 = arith.mulf %84, %88 : vector<8x8xf32>
    %c0_48 = arith.constant 0 : index
    %c3 = arith.constant 3 : index
    %c0_49 = arith.constant 0 : index
    %c0_50 = arith.constant 0 : index
    %90 = vector.load %arg8[%c0_48, %c3, %c0_49, %c0_50] : memref<1x4x8x8xf32, #tpu.memory_space<vmem>>, vector<1x1x8x8xf32>
    %91 = vector.shape_cast %90 : vector<1x1x8x8xf32> to vector<8x8xf32>
    %92 = vector.shape_cast %89 : vector<8x8xf32> to vector<1x1x8x8xf32>
    tpu.vector_store %arg8[%c0_48, %c3, %c0_49, %c0_50], %92 {strides = array<i32>} : memref<1x4x8x8xf32, #tpu.memory_space<vmem>>, vector<1x1x8x8xf32>,
    %cst_51 = arith.constant dense<0.000000e+00> : vector<8x8xf32>
    %93 = tpu.matmul %89, %77, %cst_51 {dimension_numbers = #tpu.dot_dimension_numbers<[1], [0], [0], [1], [0, 0, 1, 1], [], []>} : vector<8x8xf32>, vector<8x8xf32>, vector<8x8xf32> -> vector<8x8xf32>
    %c0_52 = arith.constant 0 : index
    %c24 = arith.constant 24 : index
    %94 = vector.load %arg10[%c0_52, %c24] : memref<8x32xf32, #tpu.memory_space<vmem>>, vector<8x8xf32>
    tpu.vector_store %arg10[%c0_52, %c24], %93 {strides = array<i32>} : memref<8x32xf32, #tpu.memory_space<vmem>>, vector<8x8xf32>,
    %c0_53 = arith.constant 0 : index
    %c0_54 = arith.constant 0 : index
    %95 = vector.load %arg9[%c0_53, %c0_54] : memref<8x32xf32, #tpu.memory_space<vmem>>, vector<8x32xf32>
    %c0_55 = arith.constant 0 : index
    %c0_56 = arith.constant 0 : index
    %96 = vector.load %arg10[%c0_55, %c0_56] : memref<8x32xf32, #tpu.memory_space<vmem>>, vector<8x32xf32>
    %c0_57 = arith.constant 0 : index
    %c0_58 = arith.constant 0 : index
    %c0_59 = arith.constant 0 : index
    %97 = vector.load %arg4[%c0_57, %c0_58, %c0_59] : memref<1x32x32xf32, #tpu.memory_space<vmem>>, vector<1x32x32xf32>
    %98 = vector.shape_cast %97 : vector<1x32x32xf32> to vector<32x32xf32>
    %cst_60 = arith.constant dense<0.000000e+00> : vector<8x32xf32>
    %99 = tpu.matmul %96, %98, %cst_60 {dimension_numbers = #tpu.dot_dimension_numbers<[1], [0], [0], [1], [0, 0, 1, 1], [], []>} : vector<8x32xf32>, vector<32x32xf32>, vector<8x32xf32> -> vector<8x32xf32>
    %100 = arith.addf %95, %99 : vector<8x32xf32>
    %c0_61 = arith.constant 0 : index
    %c0_62 = arith.constant 0 : index
    %101 = vector.load %arg9[%c0_61, %c0_62] : memref<8x32xf32, #tpu.memory_space<vmem>>, vector<8x32xf32>
    tpu.vector_store %arg9[%c0_61, %c0_62], %100 {strides = array<i32>} : memref<8x32xf32, #tpu.memory_space<vmem>>, vector<8x32xf32>,
    %c0_i32_63 = arith.constant 0 : i32
    %102 = arith.cmpi eq, %arg1, %c0_i32_63 : i32
    %103 = arith.extui %102 : i1 to i32
    %c0_i32_64 = arith.constant 0 : i32
    %104 = arith.cmpi ne, %103, %c0_i32_64 : i32
    scf.if %104 {
      %c0_65 = arith.constant 0 : index
      %c0_66 = arith.constant 0 : index
      %105 = vector.load %arg9[%c0_65, %c0_66] : memref<8x32xf32, #tpu.memory_space<vmem>>, vector<8x32xf32>
      %c0_67 = arith.constant 0 : index
      %c0_68 = arith.constant 0 : index
      %106 = vector.load %arg5[%c0_67, %c0_68] : memref<1x32xf32, #tpu.memory_space<vmem>>, vector<1x32xf32>
      %107 = vector.broadcast %106 : vector<1x32xf32> to vector<8x32xf32>
      %108 = arith.addf %105, %107 : vector<8x32xf32>
      %c0_69 = arith.constant 0 : index
      %c0_70 = arith.constant 0 : index
      %c0_71 = arith.constant 0 : index
      %109 = vector.load %arg7[%c0_69, %c0_70, %c0_71] : memref<1x8x32xf32, #tpu.memory_space<vmem>>, vector<1x8x32xf32>
      %110 = vector.shape_cast %109 : vector<1x8x32xf32> to vector<8x32xf32>
      %111 = vector.shape_cast %108 : vector<8x32xf32> to vector<1x8x32xf32>
      tpu.vector_store %arg7[%c0_69, %c0_70, %c0_71], %111 {strides = array<i32>} : memref<1x8x32xf32, #tpu.memory_space<vmem>>, vector<1x8x32xf32>,
    } else {
    }
    return
  }
  func.func @transform_0(%arg0: i32, %arg1: i32) -> (i32, i32, i32) {
    %c0_i32 = arith.constant 0 : i32
    %c0_i32_0 = arith.constant 0 : i32
    %c0_i32_1 = arith.constant 0 : i32
    return %arg0, %c0_i32, %c0_i32_0 : i32, i32, i32
  }
  func.func @transform_1(%arg0: i32, %arg1: i32) -> (i32, i32, i32, i32) {
    %c0_i32 = arith.constant 0 : i32
    %c0_i32_0 = arith.constant 0 : i32
    %c0_i32_1 = arith.constant 0 : i32
    %c0_i32_2 = arith.constant 0 : i32
    return %arg1, %c0_i32, %c0_i32_0, %c0_i32_1 : i32, i32, i32, i32
  }
  func.func @transform_2(%arg0: i32, %arg1: i32) -> (i32, i32, i32) {
    %c0_i32 = arith.constant 0 : i32
    %c0_i32_0 = arith.constant 0 : i32
    %c0_i32_1 = arith.constant 0 : i32
    return %arg1, %c0_i32, %c0_i32_0 : i32, i32, i32
  }
  func.func @transform_3(%arg0: i32, %arg1: i32) -> (i32, i32) {
    %c0_i32 = arith.constant 0 : i32
    %c0_i32_0 = arith.constant 0 : i32
    %c0_i32_1 = arith.constant 0 : i32
    return %c0_i32, %c0_i32_0 : i32, i32
  }
  func.func @transform_4(%arg0: i32, %arg1: i32) -> (i32, i32) {
    %c0_i32 = arith.constant 0 : i32
    %c0_i32_0 = arith.constant 0 : i32
    %c0_i32_1 = arith.constant 0 : i32
    return %c0_i32, %c0_i32_0 : i32, i32
  }
  func.func @transform_5(%arg0: i32, %arg1: i32) -> (i32, i32, i32) {
    %c0_i32 = arith.constant 0 : i32
    %c0_i32_0 = arith.constant 0 : i32
    %c0_i32_1 = arith.constant 0 : i32
    return %arg0, %c0_i32, %c0_i32_0 : i32, i32, i32
  }
  func.func @transform_6(%arg0: i32, %arg1: i32) -> (i32, i32, i32, i32) {
    %c0_i32 = arith.constant 0 : i32
    %c0_i32_0 = arith.constant 0 : i32
    %c0_i32_1 = arith.constant 0 : i32
    return %arg0, %arg1, %c0_i32, %c0_i32_0 : i32, i32, i32, i32
  }
}

</mosaic_0001>

<bundles_post_ra>
// kernel: tpu_custom_call.1
= control target key start
LH: loop header
LB: loop body
LE: loop exit
PB: predicated region body
PF: predicated region fallthrough
CT: control target
= control target key end

     0   :  { %s2447_s0 = inlined_call_operand.hbm [shape: f32[2,8,32], index: 0, kind: input, shape index: {}]   ;;  %s2448_s1 = inlined_call_operand.hbm [shape: f32[1,3,32,32], index: 1, kind: input, shape index: {}]   ;;  %s2449_s2 = inlined_call_operand.hbm [shape: f32[1,32,32], index: 2, kind: input, shape index: {}]   ;;  %s2450_s3 = inlined_call_operand.vmem [shape: f32[1,32], index: 3, kind: input, shape index: {}]   ;;  %s2451_s4 = inlined_call_operand.hbm [shape: f32[8,8], index: 4, kind: input, shape index: {}]   ;;  %s2452_s5 = inlined_call_operand.hbm [shape: f32[2,8,32], index: 5, kind: output, shape index: {0}]   ;;  %s2453_s6 = inlined_call_operand.hbm [shape: f32[2,4,8,8], index: 6, kind: output, shape index: {1}]  }
   0x1   :  { %2458 = sst [smem:[#allocation20_spill]] %s2448_s1 }
   0x2   :  { %2459 = sst [smem:[#allocation21_spill]] %s2449_s2 }
   0x3   :  { %12 = vsyncpa [#allocation5], 0 }
   0x4   :  { %14 = vsyncpa [#allocation5 + $0x1], 0 }
   0x5   :  { %15 = vsyncpa [#allocation8], 0 }
   0x6   :  { %16 = vsyncpa [#allocation11], 0 }
   0x7   :  { %17 = vsyncpa [#allocation6], 0 }
   0x8   :  { %19 = vsyncpa [#allocation6 + $0x1], 0 }
   0x9   :  { %20 = vsyncpa [#allocation14], 0 }
   0xa   :  { %22 = vsyncpa [#allocation14 + $0x1], 0  ;;  %s2114_s21 = smov 0   ;;  %s2116_s22 = smov 0  }
   0xb   :  { %s2118_s23 = smov 0   ;;  %s2120_s24 = smov 0  }
   0xc   :  { %s2122_s25 = smov 0   ;;  %s2124_s26 = smov 0  }
   0xd LB: > { %s1547_s27 = sadd.s32 4294967295, %s2060_s26   ;;  %s1548_s28 = sadd.s32 4294967294, %s2060_s26   ;;  %s2060_s26 = sphi %s2124_s26, %s28_s26   ;;  %s2056_s25 = sphi %s2122_s25, %s2479_s25   ;;  %s2052_s24 = sphi %s2120_s24, %s2478_s24   ;;  %s2048_s23 = sphi %s2118_s23, %s2477_s23   ;;  %s2044_s22 = sphi %s2116_s22, %s2476_s22   ;;  %s2040_s21 = sphi %s2114_s21, %s2475_s21  }
   0xe   : > { %p60_p0 = scmp.ne.s32.totalorder %s2044_s22, %s2040_s21  ;;  %p2148_p1 = scmp.eq.s32.totalorder %s1547_s27, 0 }
   0xf   : > { %p2152_p2 = scmp.eq.s32.totalorder %s1547_s27, 1  ;;  %p184_p3 = scmp.eq.s32.totalorder %s1548_s28, 1 }
  0x10   : > { %s2460_s29 = scalar_select %p2148_p1, 1, 0 }
  0x11   : > { %p2158_p4 = por %p2148_p1, %p60_p0  ;;  %p1549_p5 = scmp.ge.s32.totalorder %s2060_s26, 1 }
  0x12   : > { %p2163_p6 = por %p184_p3, %p60_p0  ;;  %p219_p7 = scmp.lt.s32.totalorder %s2060_s26, 3 }
  0x13   : > { %s2462_s7 = scalar_select %p2158_p4, 1, 0 }
  0x14   : > { %s2463_s8 = scalar_select %p2163_p6, 1, 0 }
  0x15   : > { %p2168_p8 = pnand %p1549_p5, %p219_p7  ;;  %s2062_s10 = smov [#allocation7]  }
  0x16   : > { %s234_s11 = sshll.u32 %s2062_s10, 4  ;;  %s2063_s13 = smov [#allocation9]   ;;  %s235_s11 = int_to_ptr.vmem [resolvable:$true] %s234_s11 }
  0x17   : > { %s2464_s9 = scalar_select %p2168_p8, 1, 0 }
  0x18   : > { %p1729_p9 = pneg %p2168_p8  ;;  %s250_s14 = sshll.u32 %s2063_s13, 4  ;;  %s251_s14 = int_to_ptr.vmem [resolvable:$true] %s250_s14 }
  0x19   : > { %s2064_s15 = smov [#allocation10]   ;;  %s1847_s17 = scalar_lea.vmem %s235_s11, 1536 }
  0x1a   : > { %p2177_p11 = pnand %p1729_p9, %p2148_p1  ;;  %s267_s16 = sshll.u32 %s2064_s15, 4  ;;  %s268_s16 = int_to_ptr.vmem [resolvable:$true] %s267_s16 }
  0x1b   : > { %p1848_p13 = scmp.ne.s32.totalorder %s235_s11, %s1847_s17  ;;  %p1855_p5 = scmp.lt.s32.totalorder %s235_s11, %s235_s11 }
  0x1c   : > { %p1838_p12 = pneg %p2177_p11  ;;  %p1856_p7 = scmp.lt.s32.totalorder %s1847_s17, %s1847_s17 }
  0x1e   : > { %p1850_p0 = pnand %p1848_p13, %p1838_p12  ;;  %p1857_p9 = por %p1856_p7, %p1855_p5 }
  0x20   : > { %p1851_p3 = pneg %p1850_p0 }
  0x22   : > { %p1858_p10 = pnand %p1857_p9, %p1851_p3 }
  0x24   : > { %1861 = shalt.err (!%p1858_p10)
}
  0x25   : > { %s2065_s18 = smov 128   ;;  %s2066_s19 = smov 8  }
  0x26   : > { %s2466_s1 = sld [smem:[#allocation20_spill]]  ;;  %s1873_s28 = scalar_lea.vmem %s251_s14, 512 }
  0x27   : > { %p1874_p6 = scmp.ne.s32.totalorder %s251_s14, %s1873_s28  ;;  %p1881_p1 = scmp.lt.s32.totalorder %s251_s14, %s251_s14 }
  0x28   : > { %p1882_p4 = scmp.lt.s32.totalorder %s1873_s28, %s1873_s28 }
  0x29   : > { %p1876_p13 = pnand %p1874_p6, %p1838_p12 }
  0x2a   : > { %p1883_p5 = por %p1882_p4, %p1881_p1 }
  0x2b   : > { %p1877_p0 = pneg %p1876_p13 }
  0x2c   : > { %1732 = dma.hbm_to_vmem [thread:$0]  (!%p2177_p11), %s2466_s1, 1536, %s235_s11, [#allocation8], %s2065_s18, %s2065_s18, %s2066_s19  }
  0x2d   : > { %p1884_p3 = pnand %p1883_p5, %p1877_p0 }
  0x2f   : > { %1887 = shalt.err (!%p1884_p3)
}
  0x30   : > { %s2467_s2 = sld [smem:[#allocation21_spill]]  ;;  %s1899_s11 = scalar_lea.vmem %s268_s16, 128 }
  0x31   : > { %p1900_p10 = scmp.ne.s32.totalorder %s268_s16, %s1899_s11  ;;  %p1907_p9 = scmp.lt.s32.totalorder %s268_s16, %s268_s16 }
  0x32   : > { %p1908_p13 = scmp.lt.s32.totalorder %s1899_s11, %s1899_s11 }
  0x33   : > { %p1902_p7 = pnand %p1900_p10, %p1838_p12 }
  0x34   : > { %p1909_p8 = por %p1908_p13, %p1907_p9 }
  0x35   : > { %p1903_p6 = pneg %p1902_p7 }
  0x36   : > { %1735 = dma.hbm_to_vmem [thread:$0]  (!%p2177_p11), %s2467_s2, 512, %s251_s14, [#allocation8], %s2065_s18, %s2065_s18, %s2066_s19  }
  0x37   : > { %p1910_p1 = pnand %p1909_p8, %p1903_p6 }
  0x39   : > { %1913 = shalt.err (!%p1910_p1)
}
  0x3a   : > { %1738 = dma.hbm_to_vmem [thread:$0]  (!%p2177_p11), %s2451_s4, 128, %s268_s16, [#allocation11]  }
  0x3b   : > { %s47_s14 = sadd.s32 1, %s2048_s23  ;;  %s40_s18 = sadd.s32 1, %s2056_s25 }
  0x3c   : > { %p54_p4 = scmp.ne.s32.totalorder %s2048_s23, %s2044_s22  ;;  %p42_p8 = scmp.ge.s32.totalorder %s40_s18, 2 }
  0x3d   : > { %p55_p12 = scmp.eq.s32.totalorder %s2060_s26, 0  ;;  %p1753_p5 = scmp.lt.s32.totalorder %s2060_s26, 2 }
  0x3e   : > { %p2214_p0 = por %p2152_p2, %p54_p4  ;;  %s2481_s18 = smov (%p42_p8, %s40_s18), 0 }
  0x3f   : > { %p56_p3 = por %p55_p12, %p54_p4  ;;  %s278_s19 = sand.u32 1, %s2048_s23  }
  0x40   : > { %s44_s20 = ssub.s32 %s2056_s25, %s2481_s18  ;;  %s1554_s16 = sshll.u32 %s278_s19, 3 }
  0x41   : > { %p45_p10 = scmp.eq.s32.totalorder %s44_s20, 0  ;;  %s1555_s27 = sshll.u32 %s2056_s25, 7 }
  0x42   : > { %s287_s30 = scalar_lea.hbm %s2447_s0, %s1555_s27  ;;  %s282_s11 = scalar_lea.vmem [#allocation4], %s1554_s16 }
  0x43   : > { %s2226_s28 = scalar_select %p45_p10, %s2048_s23, %s47_s14  }
  0x44   : > { %s289_s15 = sshll.u32 %s282_s11, 4  ;;  %p2233_p2 = pnand %p1753_p5, %p56_p3  ;;  %s290_s15 = int_to_ptr.vmem [resolvable:$true] %s289_s15 }
  0x45   : > { %s279_s1 = scalar_lea.sflag [#allocation5], %s278_s19  ;;  %s1927_s20 = scalar_lea.vmem %s290_s15, 128 }
  0x46   : > { %p1916_p11 = pneg %p2233_p2  ;;  %p1928_p7 = scmp.ne.s32.totalorder %s290_s15, %s1927_s20 }
  0x47   : > { %s2067_s14 = smov [#allocation4]  }
  0x48   : > { %p1930_p6 = pnand %p1928_p7, %p1916_p11  ;;  %s1932_s2 = sshll.u32 %s2067_s14, 4  ;;  %s1933_s2 = int_to_ptr.vmem [resolvable:$false] %s1932_s2 }
  0x49   : > { %s1934_s27 = scalar_lea.vmem %s1933_s2, 256  ;;  %p1935_p13 = scmp.lt.s32.totalorder %s290_s15, %s1933_s2 }
  0x4a   : > { %p1931_p9 = pneg %p1930_p6  ;;  %p1936_p1 = scmp.lt.s32.totalorder %s1934_s27, %s1927_s20 }
  0x4c   : > { %p1937_p4 = por %p1936_p1, %p1935_p13 }
  0x4e   : > { %p1938_p8 = pnand %p1937_p4, %p1931_p9 }
  0x50   : > { %1941 = shalt.err (!%p1938_p8)
}
  0x51   : > { %1742 = dma.hbm_to_vmem [thread:$0]  (!%p2233_p2), %s287_s30, 128, %s290_s15, %s279_s1  }
  0x52   : > { %p2470_p12 = scmp.ne.s32.totalorder %s2464_s9, 0 }
  0x53   : > { %s2244_s19 = sand.u32 (!%p2470_p12), 1, %s2044_s22   ;;  %p2471_p5 = scmp.ne.s32.totalorder (!%p2470_p12), %s2462_s7, 0 }
  0x54   : > { %298 = sbr.rel (%p2470_p12) target bundleno = 1918 (0x77e), region = 40  ;;  %s1557_s16 = sshll.u32 (!%p2470_p12), %s2244_s19, 3 }
  0x55   : > { %s301_s10 = scalar_lea.sflag (!%p2470_p12), [#allocation5], %s2244_s19  ;;  %s2250_s2 = scalar_lea.vmem (!%p2470_p12), [#allocation4], %s1557_s16 }
  0x59   : > { %2019 = dma.done.wait (%p2471_p5), %s301_s10, 128  }
  0x5a   : > { %2021 = vsyncadd (%p2471_p5), %s301_s10, 4294967168  ;;  %p2472_p3 = scmp.ne.s32.totalorder %s2460_s29, 0 }
  0x5c   : > { %2023 = dma.done.wait (%p2472_p3), [#allocation8], 2048  }
  0x5d   : > { %2025 = vsyncadd (%p2472_p3), [#allocation8], 4294965248 }
  0x5e   : > { %2027 = dma.done.wait (%p2472_p3), [#allocation11], 128  }
  0x5f   : > { %2029 = vsyncadd (%p2472_p3), [#allocation11], 4294967168  ;;  %vm355_vm0 = vcmask 261120   ;;  %v2068_v0 = vmov 0.0   ;;  %vm2069_vm1 = vmmov 0   ;;  %v440_v1 = vld [vmem:[#allocation7 + $0x38] sm:$0xff] }
  0x60   : > { %1638 = vmatprep.subr.mxu1 %v2068_v0  ;;  %1627 = vmatprep.subr.mxu0 %v2068_v0  ;;  %356 = vst.msk [vmem:[#allocation2] sm:$0xff] %vm355_vm0, %v2068_v0  ;;  %v361_v2 = vld [vmem:[#allocation7 + $0x18] sm:$0xff]  ;;  %v439_v3 = vld [vmem:[#allocation7 + $0x30] sm:$0xff]  ;;  %v438_v5 = vld [vmem:[#allocation7 + $0x28] sm:$0xff]  ;;  %vm587_vm2 = vcmask 64512   ;;  %s2070_s1 = smov 120  }
  0x61   : > { %1646 = vmatprep.mubr.msk.f32.mxu1 %vm2069_vm1, %v2068_v0  ;;  %1635 = vmatprep.mubr.msk.f32.mxu0 %vm2069_vm1, %v2068_v0  ;;  %v360_v4 = vld [vmem:[#allocation7 + $0x10] sm:$0xff]  ;;  %v359_v6 = vld [vmem:[#allocation7 + $0x8] sm:$0xff]  ;;  %v437_v7 = vld [vmem:[#allocation7 + $0x20] sm:$0xff]  ;;  %s2071_s29 = smov 112   ;;  %s2072_s7 = smov 104   ;;  %vm922_vm3 = vcmask 130112  }
  0x62   : > { %1639 = vmatpush3.msra.mxu1 %v440_v1  ;;  %1628 = vmatpush3.msra.mxu0 %v361_v2  ;;  %v358_v8 = vld [vmem:[#allocation7] sm:$0xff]  ;;  %v357_v9 = vld [vmem:[%s2250_s2] sm:$0xff]  ;;  %v513_v16 = vld [vmem:[#allocation7 + $0x48] sm:$0xff]  ;;  %s1562_s9 = sshll.u32 %s2244_s19, 5  ;;  %s2073_s30 = smov 8   ;;  %vm1095_vm4 = vcmask 195712  }
  0x63   : > { %1640 = vmatprep.subr.mxu1 %v2068_v0  ;;  %1629 = vmatprep.subr.mxu0 %v2068_v0  ;;  %v515_v14 = vld [vmem:[#allocation7 + $0x58] sm:$0xff]  ;;  %v514_v15 = vld [vmem:[#allocation7 + $0x50] sm:$0xff]  ;;  %v512_v17 = vld [vmem:[#allocation7 + $0x40] sm:$0xff]  ;;  %s2322_s13 = scalar_lea.vmem [#allocation13], %s1562_s9  ;;  %s2074_s11 = smov 16   ;;  %vm1268_vm5 = vcmask 261312  }
  0x64   : > { %1641 = vmatpush3.msra.mxu1 %v439_v3  ;;  %1630 = vmatpush3.msra.mxu0 %v360_v4  ;;  %v586_v18 = vld [vmem:[#allocation10] sm:$0xff]  ;;  %s2075_s15 = smov 24   ;;  %s1590_s17 = sshll.u32 %s2052_s24, 9 }
  0x65   : > { %1642 = vmatprep.subr.mxu1 %v2068_v0  ;;  %1631 = vmatprep.subr.mxu0 %v2068_v0  ;;  %s1398_s20 = sshll.u32 %s2322_s13, 4  ;;  %s2372_s10 = scalar_lea.hbm %s2453_s6, %s1590_s17  ;;  %s2374_s20 = int_to_ptr.vmem [resolvable:$true] %s1398_s20 }
  0x66   : > { %1643 = vmatpush3.msra.mxu1 %v438_v5  ;;  %1632 = vmatpush3.msra.mxu0 %v359_v6  ;;  %s1370_s2 = scalar_lea.sflag [#allocation14], %s2244_s19 }
  0x67   : > { %1644 = vmatprep.subr.mxu1 %v2068_v0  ;;  %1633 = vmatprep.subr.mxu0 %v2068_v0 }
  0x68   : > { %1645 = vmatpush3.msra.mxu1 %v437_v7  ;;  %1634 = vmatpush3.msra.mxu0 %v358_v8 }
  0x69   : > { %1647 = vmatmul.mubr.msk.f32.vlgmr.msra.gmra.mxu1 %vm355_vm0, %v357_v9  ;;  %1636 = vmatmul.mubr.msk.f32.vlgmr.msra.gmra.mxu0 %vm355_vm0, %v357_v9 }
  0x6a   : > { %1660 = vmatprep.subr.mxu1 %v2068_v0  ;;  %1662 = vmatprep.mubr.msk.f32.mxu1 %vm2069_vm1, %v2068_v0 }
  0x6b   : > { %1649 = vmatprep.subr.mxu0 %v2068_v0  ;;  %1657 = vmatprep.mubr.msk.f32.mxu0 %vm2069_vm1, %v2068_v0 }
  0x6c   : > { %1650 = vmatpush3.msra.mxu0 %v515_v14 }
  0x6d   : > { %1651 = vmatprep.subr.mxu0 %v2068_v0 }
  0x6e   : > { %1652 = vmatpush3.msra.mxu0 %v514_v15 }
  0x6f   : > { %1653 = vmatprep.subr.mxu0 %v2068_v0 }
  0x70   : > { %1654 = vmatpush3.msra.mxu0 %v513_v16 }
  0x71   : > { %1655 = vmatprep.subr.mxu0 %v2068_v0 }
  0x72   : > { %1656 = vmatpush3.msra.mxu0 %v512_v17  ;;  %v1275_v17 = vld [vmem:[#allocation9 + $0x18] sm:$0xff] }
  0x73   : > { %1658 = vmatmul.mubr.msk.f32.vlgmr.msra.gmra.mxu0 %vm355_vm0, %v357_v9  ;;  %1680 = vmatprep.subr.mxu0 %v2068_v0 }
  0x74   : > { %1682 = vmatprep.mubr.msk.f32.mxu0 %vm2069_vm1, %v2068_v0 }
 0x129   : > { %v507_v10 = vpop.f32.mrf.mxu1  ;;  %v432_v11 = vpop.f32.mrf.mxu0 }
 0x12a   : > { %752 = vrot.lane.b32.xlu1 %v507_v10, %s2070_s1  ;;  %1661 = vmatpush3.xpose.msk.msra.mxu1 %vm587_vm2, %v507_v10 }
 0x12b   : > { %v1648_v12 = vpop.f32.mrf.mxu1  ;;  %v1637_v13 = vpop.f32.mrf.mxu0  ;;  %1665 = vmatprep.subr.mxu1 %v2068_v0 }
 0x12d   : > { %1663 = vmatmul.mubr.msk.f32.vlgmr.msra.gmra.mxu1 %vm587_vm2, %v432_v11 }
 0x12e   : > { %750 = vrot.lane.b32.xlu1 %v432_v11, %s2070_s1  ;;  %1667 = vmatprep.mubr.msk.f32.mxu1 %vm2069_vm1, %v2068_v0 }
 0x132   : > { %924 = vrot.lane.b32.xlu1 %v432_v11, %s2071_s29 }
 0x133   : > { %v2306_v28 = vpop.f32.mrf.mxu0 }
 0x134   : > { %1666 = vmatpush3.msra.mxu1 %v2306_v28 }
 0x135   : > { %v1659_v29 = vpop.f32.mrf.mxu0  ;;  %1670 = vmatprep.subr.mxu1 %v2068_v0 }
 0x136   : > { %1099 = vrot.lane.b32.xlu1 %v507_v10, %s2072_s7 }
 0x13a   : > { %1097 = vrot.lane.b32.xlu1 %v432_v11, %s2072_s7 }
 0x19c   : > { %v753_v30 = vpop.permute.xlu1 %752 }
 0x1a0   : > { %v751_v31 = vpop.permute.xlu1 %750 }
 0x1a4   : > { %v925_v32 = vpop.permute.xlu1 %924 }
 0x1a8   : > { %v1100_v35 = vpop.permute.xlu1 %1099 }
 0x1ac   : > { %v1098_v36 = vpop.permute.xlu1 %1097 }
 0x1ed   : > { %v660_v19 = vpop.f32.mrf.mxu1 }
 0x1ee   : > { %v661_v20 = vadd.f32 %v660_v19, %v586_v18  ;;  %v1273_v19 = vld [vmem:[#allocation9 + $0x8] sm:$0xff] }
 0x1ef   : > { %v1664_v21 = vpop.f32.mrf.mxu1 }
 0x1f0   : > { %v664_v22 = vsel %vm587_vm2, %v661_v20, -inf  ;;  %v1272_v21 = vld [vmem:[#allocation9] sm:$0xff] }
 0x1f1   : > { %665 = vmax.xlane.f32.xlu0 %v664_v22 }
 0x27a   : > { %v666_v23 = vpop.xlane.xlu0 %665 }
 0x27b   : > { %v667_v24 = vsub.f32 %v661_v20, %v666_v23 }
 0x27d   : > { %v668_v25 = vmul.f32 1.442695, %v667_v24 }
 0x27f   : > { %1820 = vpow2.f32 %v668_v25 }
 0x28c   : > { %v1821_v26 = vpop.eup %1820 }
 0x28d   : > { %v670_v27 = vsel %vm587_vm2, %v1821_v26, 0.0 }
 0x28e   : > { %671 = vadd.xlane.f32.xlu0 %v670_v27 }
 0x2a4   : > { %926 = vrot.lane.b32.xlu0 %v507_v10, %s2071_s29 }
 0x317   : > { %v672_v33 = vpop.xlane.xlu0 %671 }
 0x318   : > { %1822 = vrcp.f32 %v672_v33 }
 0x31b   : > { %v927_v34 = vpop.permute.xlu0 %926 }
 0x31c   : > { %1681 = vmatpush3.xpose.msk.msra.mxu0 %vm587_vm2, %v927_v34 }
 0x31d   : > { %1690 = vmatprep.subr.mxu0 %v2068_v0 }
 0x31f   : > { %1683 = vmatmul.mubr.msk.f32.vlgmr.msra.gmra.mxu0 %vm587_vm2, %v925_v32 }
 0x320   : > { %1691 = vmatpush3.xpose.msk.msra.mxu0 %vm587_vm2, %v1100_v35  ;;  %1692 = vmatprep.mubr.msk.f32.mxu0 %vm2069_vm1, %v2068_v0 }
 0x321   : > { %1700 = vmatprep.subr.mxu0 %v2068_v0 }
 0x323   : > { %1693 = vmatmul.mubr.msk.f32.vlgmr.msra.gmra.mxu0 %vm587_vm2, %v1098_v36 }
 0x324   : > { %1708 = vmatprep.mubr.msk.f32.mxu0 %vm2069_vm1, %v2068_v0  ;;  %1701 = vmatpush3.msra.mxu0 %v1275_v17 }
 0x325   : > { %v1823_v37 = vpop.eup %1822  ;;  %1702 = vmatprep.subr.mxu0 %v2068_v0 }
 0x326   : > { %v674_v38 = vmul.f32 %v1823_v37, %v1821_v26 }
 0x328   : > { %675 = vst.msk [vmem:[%s2322_s13] sm:$0xff] %vm587_vm2, %v674_v38  ;;  %1668 = vmatmul.mubr.msk.f32.vlgmr.msra.gmra.mxu1 %vm587_vm2, %v674_v38 }
 0x329   : > { %1671 = vmatpush3.xpose.msk.msra.mxu1 %vm587_vm2, %v753_v30  ;;  %1672 = vmatprep.mubr.msk.f32.mxu1 %vm2069_vm1, %v2068_v0 }
 0x32a   : > { %1675 = vmatprep.subr.mxu1 %v2068_v0 }
 0x32c   : > { %1673 = vmatmul.mubr.msk.f32.vlgmr.msra.gmra.mxu1 %vm587_vm2, %v751_v31 }
 0x32d   : > { %1677 = vmatprep.mubr.msk.f32.mxu1 %vm2069_vm1, %v2068_v0 }
 0x3df   : > { %v998_v39 = vpop.f32.mrf.mxu0 }
 0x3e0   : > { %v999_v40 = vadd.f32 %v998_v39, %v586_v18 }
 0x3e1   : > { %v1684_v41 = vpop.f32.mrf.mxu0 }
 0x3e2   : > { %v1002_v42 = vsel %vm587_vm2, %v999_v40, -inf }
 0x3e3   : > { %1003 = vmax.xlane.f32.xlu0 %v1002_v42  ;;  %v1171_v43 = vpop.f32.mrf.mxu0 }
 0x3e4   : > { %v1172_v50 = vadd.f32 %v1171_v43, %v586_v18 }
 0x3e5   : > { %v1694_v44 = vpop.f32.mrf.mxu0 }
 0x3e6   : > { %v1175_v52 = vsel %vm587_vm2, %v1172_v50, -inf }
 0x3e8   : > { %v745_v45 = vpop.f32.mrf.mxu1 }
 0x3e9   : > { %749 = vst.msk [vmem:[#allocation3] sm:$0xff] %vm587_vm2, %v745_v45 }
 0x3ea   : > { %v1669_v46 = vpop.f32.mrf.mxu1 }
 0x3ec   : > { %v824_v47 = vpop.f32.mrf.mxu1 }
 0x3ed   : > { %v825_v48 = vadd.f32 %v824_v47, %v586_v18  ;;  %v1274_v18 = vld [vmem:[#allocation9 + $0x10] sm:$0xff] }
 0x3ee   : > { %v1674_v49 = vpop.f32.mrf.mxu1  ;;  %1703 = vmatpush3.msra.mxu0 %v1274_v18 }
 0x3ef   : > { %v828_v51 = vsel %vm587_vm2, %v825_v48, -inf  ;;  %1704 = vmatprep.subr.mxu0 %v2068_v0 }
 0x3f0   : > { %829 = vmax.xlane.f32.xlu1 %v828_v51  ;;  %1705 = vmatpush3.msra.mxu0 %v1273_v19 }
 0x3f1   : > { %1706 = vmatprep.subr.mxu0 %v2068_v0 }
 0x3f2   : > { %1707 = vmatpush3.msra.mxu0 %v1272_v21 }
 0x3f4   : > { %1176 = vmax.xlane.f32.xlu1 %v1175_v52 }
 0x46c   : > { %v1004_v53 = vpop.xlane.xlu0 %1003 }
 0x46d   : > { %v1005_v54 = vsub.f32 %v999_v40, %v1004_v53 }
 0x46f   : > { %v1006_v55 = vmul.f32 1.442695, %v1005_v54 }
 0x471   : > { %1824 = vpow2.f32 %v1006_v55 }
 0x479   : > { %v830_v56 = vpop.xlane.xlu1 %829 }
 0x47a   : > { %v831_v1 = vsub.f32 %v825_v48, %v830_v56 }
 0x47c   : > { %v832_v2 = vmul.f32 1.442695, %v831_v1 }
 0x47d   : > { %v1177_v57 = vpop.xlane.xlu1 %1176 }
 0x47e   : > { %v1825_v58 = vpop.eup %1824  ;;  %v1178_v59 = vsub.f32 %v1172_v50, %v1177_v57 }
 0x47f   : > { %v1008_v60 = vsel %vm587_vm2, %v1825_v58, 0.0 }
 0x480   : > { %v1179_v61 = vmul.f32 1.442695, %v1178_v59  ;;  %1009 = vadd.xlane.f32.xlu0 %v1008_v60 }
 0x482   : > { %1826 = vpow2.f32 %v1179_v61 }
 0x483   : > { %1828 = vpow2.f32 %v832_v2 }
 0x48f   : > { %v1827_v62 = vpop.eup %1826 }
 0x490   : > { %v1181_v63 = vsel %vm587_vm2, %v1827_v62, 0.0  ;;  %v1829_v3 = vpop.eup %1828 }
 0x491   : > { %1182 = vadd.xlane.f32.xlu1 %v1181_v63  ;;  %v834_v4 = vsel %vm587_vm2, %v1829_v3, 0.0 }
 0x496   : > { %842 = vrot.lane.b32.xlu0 %v2306_v28, %s2070_s1  ;;  %s1942_s1 = scalar_lea.vmem %s2374_s20, 512 }
 0x497   : > { %p1943_p10 = scmp.ne.s32.totalorder %s2374_s20, %s1942_s1 }
 0x499   : > { %p1944_p2 = pnand %p1943_p10, %p2214_p0 }
 0x49b   : > { %p1945_p11 = pneg %p1944_p2 }
 0x4a2   : > { %1015 = vrot.lane.b32.xlu1 %v2306_v28, %s2071_s29  ;;  %s2076_s29 = smov [#allocation13]  }
 0x4c6   : > { %835 = vadd.xlane.f32.xlu1 %v834_v4 }
 0x4d7   : > { %1188 = vrot.lane.b32.xlu1 %v2306_v28, %s2072_s7  ;;  %s1946_s7 = sshll.u32 %s2076_s29, 4  ;;  %s1947_s7 = int_to_ptr.vmem [resolvable:$false] %s1946_s7 }
 0x4d8   : > { %s1948_s9 = scalar_lea.vmem %s1947_s7, 1024  ;;  %p1949_p7 = scmp.lt.s32.totalorder %s2374_s20, %s1947_s7 }
 0x4d9   : > { %p1950_p6 = scmp.lt.s32.totalorder %s1948_s9, %s1942_s1 }
 0x4db   : > { %p1951_p9 = por %p1950_p6, %p1949_p7 }
 0x4dd   : > { %p1952_p13 = pnand %p1951_p9, %p1945_p11 }
 0x509   : > { %v1010_v5 = vpop.xlane.xlu0 %1009 }
 0x50a   : > { %1830 = vrcp.f32 %v1010_v5 }
 0x50d   : > { %v843_v6 = vpop.permute.xlu0 %842 }
 0x50e   : > { %1676 = vmatpush3.msra.mxu1 %v843_v6 }
 0x50f   : > { %1685 = vmatprep.subr.mxu1 %v2068_v0 }
 0x517   : > { %v1831_v7 = vpop.eup %1830 }
 0x518   : > { %v1012_v8 = vmul.f32 %v1831_v7, %v1825_v58 }
 0x51a   : > { %v1183_v9 = vpop.xlane.xlu1 %1182  ;;  %1575 = vst.msk [vmem:[%s2322_s13 + $0x10] sm:$0xff] %vm587_vm2, %v1012_v8 }
 0x51b   : > { %1832 = vrcp.f32 %v1183_v9 }
 0x51e   : > { %v1016_v12 = vpop.permute.xlu1 %1015 }
 0x528   : > { %v1833_v10 = vpop.eup %1832 }
 0x529   : > { %v1185_v11 = vmul.f32 %v1833_v10, %v1827_v62 }
 0x52b   : > { %1579 = vst.msk [vmem:[%s2322_s13 + $0x18] sm:$0xff] %vm587_vm2, %v1185_v11 }
 0x54f   : > { %v836_v13 = vpop.xlane.xlu1 %835 }
 0x550   : > { %1834 = vrcp.f32 %v836_v13 }
 0x553   : > { %v1189_v16 = vpop.permute.xlu1 %1188 }
 0x55d   : > { %v1835_v14 = vpop.eup %1834 }
 0x55e   : > { %v838_v15 = vmul.f32 %v1835_v14, %v1829_v3 }
 0x560   : > { %1571 = vst.msk [vmem:[%s2322_s13 + $0x8] sm:$0xff] %vm587_vm2, %v838_v15  ;;  %1678 = vmatmul.mubr.msk.f32.vlgmr.msra.gmra.mxu1 %vm587_vm2, %v838_v15 }
 0x561   : > { %1686 = vmatpush3.msra.mxu1 %v1016_v12  ;;  %1687 = vmatprep.mubr.msk.f32.mxu1 %vm2069_vm1, %v2068_v0 }
 0x562   : > { %1695 = vmatprep.subr.mxu1 %v2068_v0 }
 0x564   : > { %1688 = vmatmul.mubr.msk.f32.vlgmr.msra.gmra.mxu1 %vm587_vm2, %v1012_v8 }
 0x565   : > { %1696 = vmatpush3.msra.mxu1 %v1189_v16  ;;  %1697 = vmatprep.mubr.msk.f32.mxu1 %vm2069_vm1, %v2068_v0 }
 0x568   : > { %1698 = vmatmul.mubr.msk.f32.vlgmr.msra.gmra.mxu1 %vm587_vm2, %v1185_v11 }
 0x620   : > { %v914_v20 = vpop.f32.mrf.mxu1 }
 0x621   : > { %919 = vrot.lane.b32.xlu0 %v914_v20, %s2073_s30 }
 0x622   : > { %v1679_v22 = vpop.f32.mrf.mxu1 }
 0x624   : > { %v1087_v23 = vpop.f32.mrf.mxu1 }
 0x625   : > { %1092 = vrot.lane.b32.xlu1 %v1087_v23, %s2074_s11 }
 0x626   : > { %v1689_v24 = vpop.f32.mrf.mxu1 }
 0x628   : > { %v1260_v25 = vpop.f32.mrf.mxu1 }
 0x629   : > { %1265 = vrot.lane.b32.xlu0 %v1260_v25, %s2075_s15 }
 0x62a   : > { %v1699_v26 = vpop.f32.mrf.mxu1 }
 0x693   : > { %v920_v27 = vpop.permute.xlu0 %919 }
 0x694   : > { %923 = vst.msk [vmem:[#allocation3] sm:$0xff] %vm922_vm3, %v920_v27 }
 0x697   : > { %v1093_v28 = vpop.permute.xlu1 %1092 }
 0x698   : > { %1096 = vst.msk [vmem:[#allocation3] sm:$0xff] %vm1095_vm4, %v1093_v28 }
 0x69b   : > { %v1266_v0 = vpop.permute.xlu0 %1265 }
 0x69c   : > { %1269 = vst.msk [vmem:[#allocation3] sm:$0xff] %vm1268_vm5, %v1266_v0 }
 0x6a3   : > { %v1271_v29 = vld [vmem:[#allocation3] sm:$0xff] }
 0x6a4   : > { %1709 = vmatmul.mubr.msk.f32.vlgmr.msra.gmra.mxu0 %vm355_vm0, %v1271_v29 }
 0x6a5   : > { %1955 = shalt.err (!%p1952_p13)
}
 0x6a6   : > { %s1956_s13 = scalar_lea.hbm %s2372_s10, 512  ;;  %s1960_s17 = scalar_lea.hbm %s2453_s6, 1024 }
 0x6a7   : > { %p1957_p1 = scmp.ne.s32.totalorder %s2372_s10, %s1956_s13  ;;  %p1961_p12 = scmp.lt.s32.totalorder %s2372_s10, %s2453_s6 }
 0x6a8   : > { %p1962_p5 = scmp.lt.s32.totalorder %s1960_s17, %s1956_s13 }
 0x6a9   : > { %p1958_p4 = pnand %p1957_p1, %p2214_p0 }
 0x6aa   : > { %p1963_p3 = por %p1962_p5, %p1961_p12 }
 0x6ab   : > { %p1959_p8 = pneg %p1958_p4 }
 0x6ad   : > { %p1964_p10 = pnand %p1963_p3, %p1959_p8 }
 0x6af   : > { %1967 = shalt.err (!%p1964_p10)
}
 0x6b0   : > { %s2077_s1 = smov 128   ;;  %v1270_v30 = vld [vmem:[#allocation2] sm:$0xff]  ;;  %s1585_s9 = sshll.u32 %s2052_s24, 7 }
 0x6b1   : > { %1726 = dma.vmem_to_hbm [thread:$0]  (%p2214_p0), %s2374_s20, 512, %s2372_s10, %s1370_s2, %s2077_s1, %s2077_s1, %s2073_s30  }
 0x6b2   : > { %v1582_v34 = vld [vmem:[%s2450_s3] ss:$0 sm:$0xff]  ;;  %s342_s13 = scalar_lea.vmem [#allocation12], %s1557_s16  ;;  %s1381_s30 = scalar_lea.hbm %s2452_s5, %s1585_s9 }
 0x6b3   : > { %s1383_s11 = sshll.u32 %s342_s13, 4  ;;  %s1365_s20 = scalar_lea.sflag [#allocation6], %s2244_s19  ;;  %s1384_s11 = int_to_ptr.vmem [resolvable:$true] %s1383_s11 }
 0x6b4   : > { %s1968_s10 = scalar_lea.vmem %s1384_s11, 128  ;;  %s2078_s2 = smov [#allocation12]  }
 0x6b5   : > { %p1969_p2 = scmp.ne.s32.totalorder %s1384_s11, %s1968_s10  ;;  %s1972_s24 = sshll.u32 %s2078_s2, 4  ;;  %s1973_s24 = int_to_ptr.vmem [resolvable:$false] %s1972_s24 }
 0x6b6   : > { %s1974_s16 = scalar_lea.vmem %s1973_s24, 256  ;;  %p1975_p6 = scmp.lt.s32.totalorder %s1384_s11, %s1973_s24 }
 0x6b7   : > { %p1970_p11 = pnand %p1969_p2, %p2214_p0  ;;  %p1976_p9 = scmp.lt.s32.totalorder %s1974_s16, %s1968_s10 }
 0x6b9   : > { %p1971_p7 = pneg %p1970_p11  ;;  %p1977_p13 = por %p1976_p9, %p1975_p6 }
 0x6bb   : > { %p1978_p1 = pnand %p1977_p13, %p1971_p7 }
 0x764   : > { %v1345_v31 = vpop.f32.mrf.mxu0 }
 0x765   : > { %v1349_v32 = vadd.f32 %v1345_v31, %v1270_v30 }
 0x766   : > { %v1710_v33 = vpop.f32.mrf.mxu0 }
 0x767   : > { %1350 = vst.msk [vmem:[#allocation2] sm:$0xff] %vm355_vm0, %v1349_v32 }
 0x76e   : > { %v1354_v35 = vld [vmem:[#allocation2] sm:$0xff] }
 0x76f   : > { %v1362_v36 = vadd.f32 %v1582_v34, %v1354_v35 }
 0x771   : > { %1363 = vst.msk [vmem:[%s342_s13] sm:$0xff] %vm355_vm0, %v1362_v36 }
 0x772   : > { %1981 = shalt.err (!%p1978_p1)
}
 0x773   : > { %s1982_s14 = scalar_lea.hbm %s1381_s30, 128  ;;  %s1986_s1 = scalar_lea.hbm %s2452_s5, 256 }
 0x774   : > { %p1983_p4 = scmp.ne.s32.totalorder %s1381_s30, %s1982_s14  ;;  %p1987_p5 = scmp.lt.s32.totalorder %s1381_s30, %s2452_s5 }
 0x775   : > { %p1988_p3 = scmp.lt.s32.totalorder %s1986_s1, %s1982_s14 }
 0x776   : > { %p1984_p8 = pnand %p1983_p4, %p2214_p0 }
 0x777   : > { %p1989_p10 = por %p1988_p3, %p1987_p5 }
 0x778   : > { %p1985_p12 = pneg %p1984_p8 }
 0x77a   : > { %p1990_p2 = pnand %p1989_p10, %p1985_p12 }
 0x77c   : > { %1993 = shalt.err (!%p1990_p2)
}
 0x77d   : > { %1725 = dma.vmem_to_hbm [thread:$0]  (%p2214_p0), %s1384_s11, 128, %s1381_s30, %s1365_s20  }
 0x77e PF: > { %s1413_s9 = sand.u32 1, %s2040_s21   ;;  %p2473_p11 = scmp.ne.s32.totalorder %s2463_s8, 0 }
 0x77f   : > { %p2474_p7 = scmp.ge.s32.totalorder %s2060_s26, 2  ;;  %s1414_s13 = scalar_lea.sflag [#allocation6], %s1413_s9 }
 0x781   : > { %p1744_p6 = pnand %p2474_p7, %p2473_p11 }
 0x783   : > { %p1745_p9 = pneg %p1744_p6 }
 0x785   : > { %2031 = dma.done.wait (%p1745_p9), %s1414_s13, 128  }
 0x786   : > { %2033 = vsyncadd (%p1745_p9), %s1414_s13, 4294967168  ;;  %s1423_s15 = scalar_lea.sflag [#allocation14], %s1413_s9 }
 0x787   : > { %2035 = dma.done.wait (%p1745_p9), %s1423_s15, 512  }
 0x788   : > { %2037 = vsyncadd (%p1745_p9), %s1423_s15, 4294966784  ;;  %s28_s26 = sadd.s32 1, %s2060_s26   ;;  %s2475_s21 = smov %s2044_s22 }
 0x789   : > { %p25_p13 = scmp.ge.s32.totalorder %s28_s26, 4   ;;  %s2476_s22 = smov %s2048_s23 }
 0x78a   : > { %s2477_s23 = smov %s2226_s28  ;;  %s2478_s24 = smov %s2056_s25 }
 0x78b   : > { %s2479_s25 = smov %s2481_s18  ;;  %27 = sbr.rel (!%p25_p13) target bundleno = 13 (0xd), region = 129 }
 0x790   :  { %1428 = vsyncpa [#allocation5], 1 }
 0x791   :  { %1430 = vsyncpa [#allocation5 + $0x1], 1 }
 0x792   :  { %1431 = vsyncpa [#allocation8], 1 }
 0x793   :  { %1432 = vsyncpa [#allocation11], 1 }
 0x794   :  { %1433 = vsyncpa [#allocation6], 1 }
 0x795   :  { %1435 = vsyncpa [#allocation6 + $0x1], 1 }
 0x796   :  { %1436 = vsyncpa [#allocation14], 1 }
 0x797   :  { %1438 = vsyncpa [#allocation14 + $0x1], 1 }

</bundles_post_ra>
